<compile_context>
chip_gen: v5e
topology: v5e:2x2
jax: 0.10.0
libtpu: 0.0.40
codegen_flags: <defaults>
</compile_context>

<pallas_src>
import jax
import jax.numpy as jnp
from jax.experimental import pallas as pl
from jax.experimental.pallas import tpu as pltpu  # noqa: F401  (TPU backend)

PART = 8
BACKBONE_OUT = 2048
PART_CH = BACKBONE_OUT // PART          # 256
BOTTLENECK_CH = 256
BN_EPS = 1e-5


def _fused_head_kernel(x_ref, wc_ref, bc_ref, wl_ref, bl_ref, o_ref):
    # x_ref : (PART*B, PART_CH)        part-major rows (part p = rows [p*B, (p+1)*B))
    # wc_ref: (PART_CH, BOTTLENECK_CH) BN-folded 1x1-conv weight, (in, out)
    # bc_ref: (1, BOTTLENECK_CH)       BN-folded bias
    # wl_ref: (PART, BOTTLENECK_CH, NC) per-part classifier weights, (in, out)
    # bl_ref: (PART, 1, NC)            per-part classifier biases
    # o_ref : (B, PART*NC)             lane-dense output slab
    batch = o_ref.shape[0]
    nc = wl_ref.shape[2]

    # Shared 1x1 conv + folded BatchNorm + ReLU over ALL parts in one MXU dot.
    x = x_ref[...]                                                   # (PART*B, Cp)
    y = jnp.dot(x, wc_ref[...], preferred_element_type=jnp.float32)
    y = jnp.maximum(y + bc_ref[...], 0.0)                            # (PART*B, Cb)

    # Per-part classifiers: static unrolled loop, all weights resident in VMEM,
    # each part writes its lane slice of the dense (B, PART*NC) output.
    for p in range(PART):
        yp = y[p * batch:(p + 1) * batch, :]                         # (B, Cb)
        out_p = jnp.dot(yp, wl_ref[p], preferred_element_type=jnp.float32)
        out_p = out_p + bl_ref[p]                                    # (B, NC)
        o_ref[:, p * nc:(p + 1) * nc] = out_p.astype(o_ref.dtype)


def prepare_params(params):
    """Fold BatchNorm into the conv and pre-transpose weights.

    Call ONCE outside the per-forward path (hoists all HBM transposes /
    folding out of every call).
    """
    bn_scale = params["bn_gamma"] * jax.lax.rsqrt(params["bn_var"] + BN_EPS)
    bn_shift = params["bn_beta"] - params["bn_mean"] * bn_scale
    wc = params["conv_w"].reshape(BOTTLENECK_CH, PART_CH)            # (out, in)
    wc_eff = wc.T * bn_scale[None, :]                                # (in, out), BN folded
    bc_eff = (params["conv_b"] * bn_scale + bn_shift).reshape(1, BOTTLENECK_CH)
    wl_t = params["cls_w"].transpose(0, 2, 1)                        # (PART, Cb, NC)
    bl = params["cls_b"].reshape(PART, 1, -1)                        # (PART, 1, NC)
    return dict(wc_eff=wc_eff, bc_eff=bc_eff, wl_t=wl_t, bl=bl)


@jax.jit
def net_forward(global_features, prepared):
    """global_features: (B, 2048, 1, 1) NCHW backbone output.

    Returns (PART, B, class_num); caller may split into a list of PART tensors
    to match the PyTorch forward() which returns a list.
    """
    B = global_features.shape[0]
    class_num = prepared["wl_t"].shape[2]

    # glue: (B, 2048, 1, 1) -> (B, PART, Cp) -> part-major (PART*B, Cp)
    x = (global_features.reshape(B, PART, PART_CH)
         .transpose(1, 0, 2)
         .reshape(PART * B, PART_CH))

    out = pl.pallas_call(
        _fused_head_kernel,
        out_shape=jax.ShapeDtypeStruct((B, PART * class_num), jnp.float32),
    )(x, prepared["wc_eff"], prepared["bc_eff"], prepared["wl_t"], prepared["bl"])

    # glue: (B, PART*NC) -> (PART, B, NC)
    return out.reshape(B, PART, class_num).transpose(1, 0, 2)


def init_params(key, class_num):
    """Deterministic parameter init mirroring weights_init_kaiming /
    weights_init_classifier (eval-mode BatchNorm stats)."""
    k_conv, k_cls = jax.random.split(key)
    # Conv2d kaiming_normal_ fan_out, relu: std = sqrt(2 / (out_c * kH * kW))
    conv_std = (2.0 / (BOTTLENECK_CH * 1 * 1)) ** 0.5
    conv_w = conv_std * jax.random.normal(
        k_conv, (BOTTLENECK_CH, PART_CH, 1, 1), jnp.float32)
    conv_b = jnp.zeros((BOTTLENECK_CH,), jnp.float32)
    # BatchNorm2d: weight=1, bias=0, identity running stats (eval mode)
    bn_gamma = jnp.ones((BOTTLENECK_CH,), jnp.float32)
    bn_beta = jnp.zeros((BOTTLENECK_CH,), jnp.float32)
    bn_mean = jnp.zeros((BOTTLENECK_CH,), jnp.float32)
    bn_var = jnp.ones((BOTTLENECK_CH,), jnp.float32)
    # classifiers: normal(std=0.001), bias=0, one per part
    cls_w = 0.001 * jax.random.normal(
        k_cls, (PART, class_num, BOTTLENECK_CH), jnp.float32)
    cls_b = jnp.zeros((PART, class_num), jnp.float32)
    return dict(conv_w=conv_w, conv_b=conv_b,
                bn_gamma=bn_gamma, bn_beta=bn_beta,
                bn_mean=bn_mean, bn_var=bn_var,
                cls_w=cls_w, cls_b=cls_b)


def reference_forward(global_features, params, class_num):
    """Pure-JAX reference (unfolded BN) for correctness checking."""
    B = global_features.shape[0]
    gf = global_features.reshape(B, BACKBONE_OUT)
    wc = params["conv_w"].reshape(BOTTLENECK_CH, PART_CH)
    bn_scale = params["bn_gamma"] / jnp.sqrt(params["bn_var"] + BN_EPS)
    bn_shift = params["bn_beta"] - params["bn_mean"] * bn_scale
    outs = []
    for i in range(PART):
        part = gf[:, i * PART_CH:(i + 1) * PART_CH]
        y = part @ wc.T + params["conv_b"]
        y = y * bn_scale + bn_shift
        y = jnp.maximum(y, 0.0)
        outs.append(y @ params["cls_w"][i].T + params["cls_b"][i])
    return jnp.stack(outs, axis=0)


if __name__ == "__main__":
    B = 2
    CLASS_NUM = 16            # PART * CLASS_NUM = 128 -> exactly lane-dense output
    key = jax.random.PRNGKey(0)
    k_params, k_x = jax.random.split(key)

    params = init_params(k_params, CLASS_NUM)
    prepared = prepare_params(params)     # folded/transposed once, outside forward

    # backbone features (post resnet50 + global avg pool): (B, 2048, 1, 1)
    global_features = jax.random.normal(k_x, (B, BACKBONE_OUT, 1, 1), jnp.float32)

    out = net_forward(global_features, prepared)
    out = jax.block_until_ready(out)

    ref = reference_forward(global_features, params, CLASS_NUM)
    assert out.shape == (PART, B, CLASS_NUM)
    assert jnp.allclose(out, ref, atol=2e-4, rtol=1e-3)

    # PyTorch forward returns a list of `part` tensors of shape (B, class_num)
    outputs = [out[i] for i in range(PART)]
    assert len(outputs) == PART and outputs[0].shape == (B, CLASS_NUM)
    print("KERNEL_OK")
</pallas_src>

<mosaic_0001>
module attributes {stable_mosaic.version = 11 : i64} {
  func.func @_fused_head_kernel(%arg0: memref<16x256xf32, #tpu.memory_space<vmem>>, %arg1: memref<256x256xf32, #tpu.memory_space<vmem>>, %arg2: memref<1x256xf32, #tpu.memory_space<vmem>>, %arg3: memref<8x256x16xf32, #tpu.memory_space<vmem>>, %arg4: memref<8x1x16xf32, #tpu.memory_space<vmem>>, %arg5: memref<2x128xf32, #tpu.memory_space<vmem>>) attributes {dimension_semantics = [], scalar_prefetch = 0 : i64, scratch_operands = 0 : i64, tpu.core_type = #tpu.core_type<tc>} {
    %c0 = arith.constant 0 : index
    %c0_0 = arith.constant 0 : index
    %0 = vector.load %arg0[%c0, %c0_0] : memref<16x256xf32, #tpu.memory_space<vmem>>, vector<16x256xf32>
    %c0_1 = arith.constant 0 : index
    %c0_2 = arith.constant 0 : index
    %1 = vector.load %arg1[%c0_1, %c0_2] : memref<256x256xf32, #tpu.memory_space<vmem>>, vector<256x256xf32>
    %cst = arith.constant dense<0.000000e+00> : vector<16x256xf32>
    %2 = tpu.matmul %0, %1, %cst {dimension_numbers = #tpu.dot_dimension_numbers<[1], [0], [0], [1], [0, 0, 1, 1], [], []>} : vector<16x256xf32>, vector<256x256xf32>, vector<16x256xf32> -> vector<16x256xf32>
    %c0_3 = arith.constant 0 : index
    %c0_4 = arith.constant 0 : index
    %3 = vector.load %arg2[%c0_3, %c0_4] : memref<1x256xf32, #tpu.memory_space<vmem>>, vector<1x256xf32>
    %4 = vector.broadcast %3 : vector<1x256xf32> to vector<16x256xf32>
    %5 = arith.addf %2, %4 : vector<16x256xf32>
    %cst_5 = arith.constant 0.000000e+00 : f32
    %6 = vector.broadcast %cst_5 : f32 to vector<16x256xf32>
    %7 = arith.maximumf %5, %6 : vector<16x256xf32>
    %8 = vector.extract_strided_slice %7 {offsets = [0, 0], sizes = [2, 256], strides = [1, 1]} : vector<16x256xf32> to vector<2x256xf32>
    %c0_6 = arith.constant 0 : index
    %c0_7 = arith.constant 0 : index
    %c0_8 = arith.constant 0 : index
    %9 = vector.load %arg3[%c0_6, %c0_7, %c0_8] : memref<8x256x16xf32, #tpu.memory_space<vmem>>, vector<1x256x16xf32>
    %10 = vector.shape_cast %9 : vector<1x256x16xf32> to vector<256x16xf32>
    %cst_9 = arith.constant dense<0.000000e+00> : vector<2x16xf32>
    %11 = tpu.matmul %8, %10, %cst_9 {dimension_numbers = #tpu.dot_dimension_numbers<[1], [0], [0], [1], [0, 0, 1, 1], [], []>} : vector<2x256xf32>, vector<256x16xf32>, vector<2x16xf32> -> vector<2x16xf32>
    %c0_10 = arith.constant 0 : index
    %c0_11 = arith.constant 0 : index
    %c0_12 = arith.constant 0 : index
    %12 = vector.load %arg4[%c0_10, %c0_11, %c0_12] : memref<8x1x16xf32, #tpu.memory_space<vmem>>, vector<1x1x16xf32>
    %13 = vector.shape_cast %12 : vector<1x1x16xf32> to vector<1x16xf32>
    %14 = vector.broadcast %13 : vector<1x16xf32> to vector<2x16xf32>
    %15 = arith.addf %11, %14 : vector<2x16xf32>
    %c0_13 = arith.constant 0 : index
    %c0_14 = arith.constant 0 : index
    %16 = vector.load %arg5[%c0_13, %c0_14] : memref<2x128xf32, #tpu.memory_space<vmem>>, vector<2x16xf32>
    tpu.vector_store %arg5[%c0_13, %c0_14], %15 {strides = array<i32>} : memref<2x128xf32, #tpu.memory_space<vmem>>, vector<2x16xf32>,
    %17 = vector.extract_strided_slice %7 {offsets = [2, 0], sizes = [2, 256], strides = [1, 1]} : vector<16x256xf32> to vector<2x256xf32>
    %c1 = arith.constant 1 : index
    %c0_15 = arith.constant 0 : index
    %c0_16 = arith.constant 0 : index
    %18 = vector.load %arg3[%c1, %c0_15, %c0_16] : memref<8x256x16xf32, #tpu.memory_space<vmem>>, vector<1x256x16xf32>
    %19 = vector.shape_cast %18 : vector<1x256x16xf32> to vector<256x16xf32>
    %cst_17 = arith.constant dense<0.000000e+00> : vector<2x16xf32>
    %20 = tpu.matmul %17, %19, %cst_17 {dimension_numbers = #tpu.dot_dimension_numbers<[1], [0], [0], [1], [0, 0, 1, 1], [], []>} : vector<2x256xf32>, vector<256x16xf32>, vector<2x16xf32> -> vector<2x16xf32>
    %c1_18 = arith.constant 1 : index
    %c0_19 = arith.constant 0 : index
    %c0_20 = arith.constant 0 : index
    %21 = vector.load %arg4[%c1_18, %c0_19, %c0_20] : memref<8x1x16xf32, #tpu.memory_space<vmem>>, vector<1x1x16xf32>
    %22 = vector.shape_cast %21 : vector<1x1x16xf32> to vector<1x16xf32>
    %23 = vector.broadcast %22 : vector<1x16xf32> to vector<2x16xf32>
    %24 = arith.addf %20, %23 : vector<2x16xf32>
    %c0_21 = arith.constant 0 : index
    %c16 = arith.constant 16 : index
    %25 = vector.load %arg5[%c0_21, %c16] : memref<2x128xf32, #tpu.memory_space<vmem>>, vector<2x16xf32>
    tpu.vector_store %arg5[%c0_21, %c16], %24 {strides = array<i32>} : memref<2x128xf32, #tpu.memory_space<vmem>>, vector<2x16xf32>,
    %26 = vector.extract_strided_slice %7 {offsets = [4, 0], sizes = [2, 256], strides = [1, 1]} : vector<16x256xf32> to vector<2x256xf32>
    %c2 = arith.constant 2 : index
    %c0_22 = arith.constant 0 : index
    %c0_23 = arith.constant 0 : index
    %27 = vector.load %arg3[%c2, %c0_22, %c0_23] : memref<8x256x16xf32, #tpu.memory_space<vmem>>, vector<1x256x16xf32>
    %28 = vector.shape_cast %27 : vector<1x256x16xf32> to vector<256x16xf32>
    %cst_24 = arith.constant dense<0.000000e+00> : vector<2x16xf32>
    %29 = tpu.matmul %26, %28, %cst_24 {dimension_numbers = #tpu.dot_dimension_numbers<[1], [0], [0], [1], [0, 0, 1, 1], [], []>} : vector<2x256xf32>, vector<256x16xf32>, vector<2x16xf32> -> vector<2x16xf32>
    %c2_25 = arith.constant 2 : index
    %c0_26 = arith.constant 0 : index
    %c0_27 = arith.constant 0 : index
    %30 = vector.load %arg4[%c2_25, %c0_26, %c0_27] : memref<8x1x16xf32, #tpu.memory_space<vmem>>, vector<1x1x16xf32>
    %31 = vector.shape_cast %30 : vector<1x1x16xf32> to vector<1x16xf32>
    %32 = vector.broadcast %31 : vector<1x16xf32> to vector<2x16xf32>
    %33 = arith.addf %29, %32 : vector<2x16xf32>
    %c0_28 = arith.constant 0 : index
    %c32 = arith.constant 32 : index
    %34 = vector.load %arg5[%c0_28, %c32] : memref<2x128xf32, #tpu.memory_space<vmem>>, vector<2x16xf32>
    tpu.vector_store %arg5[%c0_28, %c32], %33 {strides = array<i32>} : memref<2x128xf32, #tpu.memory_space<vmem>>, vector<2x16xf32>,
    %35 = vector.extract_strided_slice %7 {offsets = [6, 0], sizes = [2, 256], strides = [1, 1]} : vector<16x256xf32> to vector<2x256xf32>
    %c3 = arith.constant 3 : index
    %c0_29 = arith.constant 0 : index
    %c0_30 = arith.constant 0 : index
    %36 = vector.load %arg3[%c3, %c0_29, %c0_30] : memref<8x256x16xf32, #tpu.memory_space<vmem>>, vector<1x256x16xf32>
    %37 = vector.shape_cast %36 : vector<1x256x16xf32> to vector<256x16xf32>
    %cst_31 = arith.constant dense<0.000000e+00> : vector<2x16xf32>
    %38 = tpu.matmul %35, %37, %cst_31 {dimension_numbers = #tpu.dot_dimension_numbers<[1], [0], [0], [1], [0, 0, 1, 1], [], []>} : vector<2x256xf32>, vector<256x16xf32>, vector<2x16xf32> -> vector<2x16xf32>
    %c3_32 = arith.constant 3 : index
    %c0_33 = arith.constant 0 : index
    %c0_34 = arith.constant 0 : index
    %39 = vector.load %arg4[%c3_32, %c0_33, %c0_34] : memref<8x1x16xf32, #tpu.memory_space<vmem>>, vector<1x1x16xf32>
    %40 = vector.shape_cast %39 : vector<1x1x16xf32> to vector<1x16xf32>
    %41 = vector.broadcast %40 : vector<1x16xf32> to vector<2x16xf32>
    %42 = arith.addf %38, %41 : vector<2x16xf32>
    %c0_35 = arith.constant 0 : index
    %c48 = arith.constant 48 : index
    %43 = vector.load %arg5[%c0_35, %c48] : memref<2x128xf32, #tpu.memory_space<vmem>>, vector<2x16xf32>
    tpu.vector_store %arg5[%c0_35, %c48], %42 {strides = array<i32>} : memref<2x128xf32, #tpu.memory_space<vmem>>, vector<2x16xf32>,
    %44 = vector.extract_strided_slice %7 {offsets = [8, 0], sizes = [2, 256], strides = [1, 1]} : vector<16x256xf32> to vector<2x256xf32>
    %c4 = arith.constant 4 : index
    %c0_36 = arith.constant 0 : index
    %c0_37 = arith.constant 0 : index
    %45 = vector.load %arg3[%c4, %c0_36, %c0_37] : memref<8x256x16xf32, #tpu.memory_space<vmem>>, vector<1x256x16xf32>
    %46 = vector.shape_cast %45 : vector<1x256x16xf32> to vector<256x16xf32>
    %cst_38 = arith.constant dense<0.000000e+00> : vector<2x16xf32>
    %47 = tpu.matmul %44, %46, %cst_38 {dimension_numbers = #tpu.dot_dimension_numbers<[1], [0], [0], [1], [0, 0, 1, 1], [], []>} : vector<2x256xf32>, vector<256x16xf32>, vector<2x16xf32> -> vector<2x16xf32>
    %c4_39 = arith.constant 4 : index
    %c0_40 = arith.constant 0 : index
    %c0_41 = arith.constant 0 : index
    %48 = vector.load %arg4[%c4_39, %c0_40, %c0_41] : memref<8x1x16xf32, #tpu.memory_space<vmem>>, vector<1x1x16xf32>
    %49 = vector.shape_cast %48 : vector<1x1x16xf32> to vector<1x16xf32>
    %50 = vector.broadcast %49 : vector<1x16xf32> to vector<2x16xf32>
    %51 = arith.addf %47, %50 : vector<2x16xf32>
    %c0_42 = arith.constant 0 : index
    %c64 = arith.constant 64 : index
    %52 = vector.load %arg5[%c0_42, %c64] : memref<2x128xf32, #tpu.memory_space<vmem>>, vector<2x16xf32>
    tpu.vector_store %arg5[%c0_42, %c64], %51 {strides = array<i32>} : memref<2x128xf32, #tpu.memory_space<vmem>>, vector<2x16xf32>,
    %53 = vector.extract_strided_slice %7 {offsets = [10, 0], sizes = [2, 256], strides = [1, 1]} : vector<16x256xf32> to vector<2x256xf32>
    %c5 = arith.constant 5 : index
    %c0_43 = arith.constant 0 : index
    %c0_44 = arith.constant 0 : index
    %54 = vector.load %arg3[%c5, %c0_43, %c0_44] : memref<8x256x16xf32, #tpu.memory_space<vmem>>, vector<1x256x16xf32>
    %55 = vector.shape_cast %54 : vector<1x256x16xf32> to vector<256x16xf32>
    %cst_45 = arith.constant dense<0.000000e+00> : vector<2x16xf32>
    %56 = tpu.matmul %53, %55, %cst_45 {dimension_numbers = #tpu.dot_dimension_numbers<[1], [0], [0], [1], [0, 0, 1, 1], [], []>} : vector<2x256xf32>, vector<256x16xf32>, vector<2x16xf32> -> vector<2x16xf32>
    %c5_46 = arith.constant 5 : index
    %c0_47 = arith.constant 0 : index
    %c0_48 = arith.constant 0 : index
    %57 = vector.load %arg4[%c5_46, %c0_47, %c0_48] : memref<8x1x16xf32, #tpu.memory_space<vmem>>, vector<1x1x16xf32>
    %58 = vector.shape_cast %57 : vector<1x1x16xf32> to vector<1x16xf32>
    %59 = vector.broadcast %58 : vector<1x16xf32> to vector<2x16xf32>
    %60 = arith.addf %56, %59 : vector<2x16xf32>
    %c0_49 = arith.constant 0 : index
    %c80 = arith.constant 80 : index
    %61 = vector.load %arg5[%c0_49, %c80] : memref<2x128xf32, #tpu.memory_space<vmem>>, vector<2x16xf32>
    tpu.vector_store %arg5[%c0_49, %c80], %60 {strides = array<i32>} : memref<2x128xf32, #tpu.memory_space<vmem>>, vector<2x16xf32>,
    %62 = vector.extract_strided_slice %7 {offsets = [12, 0], sizes = [2, 256], strides = [1, 1]} : vector<16x256xf32> to vector<2x256xf32>
    %c6 = arith.constant 6 : index
    %c0_50 = arith.constant 0 : index
    %c0_51 = arith.constant 0 : index
    %63 = vector.load %arg3[%c6, %c0_50, %c0_51] : memref<8x256x16xf32, #tpu.memory_space<vmem>>, vector<1x256x16xf32>
    %64 = vector.shape_cast %63 : vector<1x256x16xf32> to vector<256x16xf32>
    %cst_52 = arith.constant dense<0.000000e+00> : vector<2x16xf32>
    %65 = tpu.matmul %62, %64, %cst_52 {dimension_numbers = #tpu.dot_dimension_numbers<[1], [0], [0], [1], [0, 0, 1, 1], [], []>} : vector<2x256xf32>, vector<256x16xf32>, vector<2x16xf32> -> vector<2x16xf32>
    %c6_53 = arith.constant 6 : index
    %c0_54 = arith.constant 0 : index
    %c0_55 = arith.constant 0 : index
    %66 = vector.load %arg4[%c6_53, %c0_54, %c0_55] : memref<8x1x16xf32, #tpu.memory_space<vmem>>, vector<1x1x16xf32>
    %67 = vector.shape_cast %66 : vector<1x1x16xf32> to vector<1x16xf32>
    %68 = vector.broadcast %67 : vector<1x16xf32> to vector<2x16xf32>
    %69 = arith.addf %65, %68 : vector<2x16xf32>
    %c0_56 = arith.constant 0 : index
    %c96 = arith.constant 96 : index
    %70 = vector.load %arg5[%c0_56, %c96] : memref<2x128xf32, #tpu.memory_space<vmem>>, vector<2x16xf32>
    tpu.vector_store %arg5[%c0_56, %c96], %69 {strides = array<i32>} : memref<2x128xf32, #tpu.memory_space<vmem>>, vector<2x16xf32>,
    %71 = vector.extract_strided_slice %7 {offsets = [14, 0], sizes = [2, 256], strides = [1, 1]} : vector<16x256xf32> to vector<2x256xf32>
    %c7 = arith.constant 7 : index
    %c0_57 = arith.constant 0 : index
    %c0_58 = arith.constant 0 : index
    %72 = vector.load %arg3[%c7, %c0_57, %c0_58] : memref<8x256x16xf32, #tpu.memory_space<vmem>>, vector<1x256x16xf32>
    %73 = vector.shape_cast %72 : vector<1x256x16xf32> to vector<256x16xf32>
    %cst_59 = arith.constant dense<0.000000e+00> : vector<2x16xf32>
    %74 = tpu.matmul %71, %73, %cst_59 {dimension_numbers = #tpu.dot_dimension_numbers<[1], [0], [0], [1], [0, 0, 1, 1], [], []>} : vector<2x256xf32>, vector<256x16xf32>, vector<2x16xf32> -> vector<2x16xf32>
    %c7_60 = arith.constant 7 : index
    %c0_61 = arith.constant 0 : index
    %c0_62 = arith.constant 0 : index
    %75 = vector.load %arg4[%c7_60, %c0_61, %c0_62] : memref<8x1x16xf32, #tpu.memory_space<vmem>>, vector<1x1x16xf32>
    %76 = vector.shape_cast %75 : vector<1x1x16xf32> to vector<1x16xf32>
    %77 = vector.broadcast %76 : vector<1x16xf32> to vector<2x16xf32>
    %78 = arith.addf %74, %77 : vector<2x16xf32>
    %c0_63 = arith.constant 0 : index
    %c112 = arith.constant 112 : index
    %79 = vector.load %arg5[%c0_63, %c112] : memref<2x128xf32, #tpu.memory_space<vmem>>, vector<2x16xf32>
    tpu.vector_store %arg5[%c0_63, %c112], %78 {strides = array<i32>} : memref<2x128xf32, #tpu.memory_space<vmem>>, vector<2x16xf32>,
    return
  }
}

</mosaic_0001>

<bundles_post_ra>
// kernel: net_forward.1
= control target key start
LH: loop header
LB: loop body
LE: loop exit
PB: predicated region body
PF: predicated region fallthrough
CT: control target
= control target key end

     0   :  { %vm266_vm0 = vcmask 123904   ;;  %s1134_s28 = smov 16   ;;  %s1135_s30 = smov 32   ;;  %vm356_vm1 = vcmask 255104   ;;  %vm444_vm2 = vcmask 386304   ;;  %vm532_vm3 = vcmask 517504   ;;  %s2218_s1 = inlined_call_operand.vmem [shape: f32[256,256], index: 1, kind: input, shape index: {}]   ;;  %s2219_s0 = inlined_call_operand.vmem [shape: f32[16,256], index: 0, kind: input, shape index: {}]   ;;  %s2220_s3 = inlined_call_operand.vmem [shape: f32[8,256,16], index: 3, kind: input, shape index: {}]   ;;  %s2221_s4 = inlined_call_operand.vmem [shape: f32[8,1,16], index: 4, kind: input, shape index: {}]   ;;  %s2222_s2 = inlined_call_operand.vmem [shape: f32[1,256], index: 2, kind: input, shape index: {}]   ;;  %s2223_s5 = inlined_call_operand.vmem [shape: f32[2,128], index: 5, kind: output, shape index: {}]  }
   0x1   :  { %v54_v0 = vld [vmem:[%s2218_s1 + $0xf0] sm:$0xff]  ;;  %v55_v1 = vld [vmem:[%s2218_s1 + $0xf8] sm:$0xff]  ;;  %v52_v2 = vld [vmem:[%s2218_s1 + $0xe0] sm:$0xff]  ;;  %s1136_s6 = smov 48   ;;  %s1137_s8 = smov 64   ;;  %vm616_vm4 = vcmask 648704  }
   0x2   :  { %94 = vmatpush.msra.mxu0 %v54_v0  ;;  %140 = vmatpush.msra.mxu2 %v55_v1  ;;  %v86_v3 = vld [vmem:[%s2218_s1 + $0x1f0] sm:$0xff]  ;;  %v53_v4 = vld [vmem:[%s2218_s1 + $0xe8] sm:$0xff]  ;;  %v87_v5 = vld [vmem:[%s2218_s1 + $0x1f8] sm:$0xff]  ;;  %s1138_s13 = smov 80   ;;  %s1139_s16 = smov 96   ;;  %vm706_vm5 = vcmask 779904  }
   0x3   :  { %117 = vmatpush.msra.mxu1 %v86_v3  ;;  %163 = vmatpush.msra.mxu3 %v87_v5  ;;  %v50_v6 = vld [vmem:[%s2218_s1 + $0xd0] sm:$0xff]  ;;  %v84_v7 = vld [vmem:[%s2218_s1 + $0x1e0] sm:$0xff]  ;;  %v51_v8 = vld [vmem:[%s2218_s1 + $0xd8] sm:$0xff]  ;;  %s1140_s17 = smov 112   ;;  %vm794_vm6 = vcmask 911104   ;;  %vm882_vm7 = vcmask 1042304  }
   0x4   :  { %95 = vmatpush.msra.mxu0 %v52_v2  ;;  %141 = vmatpush.msra.mxu2 %v53_v4  ;;  %v85_v9 = vld [vmem:[%s2218_s1 + $0x1e8] sm:$0xff]  ;;  %v82_v10 = vld [vmem:[%s2218_s1 + $0x1d0] sm:$0xff]  ;;  %v48_v11 = vld [vmem:[%s2218_s1 + $0xc0] sm:$0xff] }
   0x5   :  { %118 = vmatpush.msra.mxu1 %v84_v7  ;;  %164 = vmatpush.msra.mxu3 %v85_v9  ;;  %v49_v12 = vld [vmem:[%s2218_s1 + $0xc8] sm:$0xff]  ;;  %v83_v13 = vld [vmem:[%s2218_s1 + $0x1d8] sm:$0xff]  ;;  %v80_v14 = vld [vmem:[%s2218_s1 + $0x1c0] sm:$0xff] }
   0x6   :  { %96 = vmatpush.msra.mxu0 %v50_v6  ;;  %142 = vmatpush.msra.mxu2 %v51_v8  ;;  %v81_v15 = vld [vmem:[%s2218_s1 + $0x1c8] sm:$0xff]  ;;  %v46_v16 = vld [vmem:[%s2218_s1 + $0xb0] sm:$0xff]  ;;  %v47_v17 = vld [vmem:[%s2218_s1 + $0xb8] sm:$0xff] }
   0x7   :  { %119 = vmatpush.msra.mxu1 %v82_v10  ;;  %165 = vmatpush.msra.mxu3 %v83_v13  ;;  %v78_v18 = vld [vmem:[%s2218_s1 + $0x1b0] sm:$0xff]  ;;  %v79_v19 = vld [vmem:[%s2218_s1 + $0x1b8] sm:$0xff]  ;;  %v44_v20 = vld [vmem:[%s2218_s1 + $0xa0] sm:$0xff] }
   0x8   :  { %97 = vmatpush.msra.mxu0 %v48_v11  ;;  %143 = vmatpush.msra.mxu2 %v49_v12  ;;  %v45_v21 = vld [vmem:[%s2218_s1 + $0xa8] sm:$0xff]  ;;  %v76_v22 = vld [vmem:[%s2218_s1 + $0x1a0] sm:$0xff]  ;;  %v42_v24 = vld [vmem:[%s2218_s1 + $0x90] sm:$0xff] }
   0x9   :  { %120 = vmatpush.msra.mxu1 %v80_v14  ;;  %166 = vmatpush.msra.mxu3 %v81_v15  ;;  %v77_v23 = vld [vmem:[%s2218_s1 + $0x1a8] sm:$0xff]  ;;  %v43_v25 = vld [vmem:[%s2218_s1 + $0x98] sm:$0xff]  ;;  %v74_v26 = vld [vmem:[%s2218_s1 + $0x190] sm:$0xff] }
   0xa   :  { %98 = vmatpush.msra.mxu0 %v46_v16  ;;  %144 = vmatpush.msra.mxu2 %v47_v17  ;;  %v75_v27 = vld [vmem:[%s2218_s1 + $0x198] sm:$0xff]  ;;  %v40_v28 = vld [vmem:[%s2218_s1 + $0x80] sm:$0xff]  ;;  %v41_v29 = vld [vmem:[%s2218_s1 + $0x88] sm:$0xff] }
   0xb   :  { %121 = vmatpush.msra.mxu1 %v78_v18  ;;  %167 = vmatpush.msra.mxu3 %v79_v19  ;;  %v72_v30 = vld [vmem:[%s2218_s1 + $0x180] sm:$0xff]  ;;  %v73_v31 = vld [vmem:[%s2218_s1 + $0x188] sm:$0xff]  ;;  %v38_v32 = vld [vmem:[%s2218_s1 + $0x70] sm:$0xff] }
   0xc   :  { %99 = vmatpush.msra.mxu0 %v44_v20  ;;  %145 = vmatpush.msra.mxu2 %v45_v21  ;;  %v39_v33 = vld [vmem:[%s2218_s1 + $0x78] sm:$0xff]  ;;  %v70_v34 = vld [vmem:[%s2218_s1 + $0x170] sm:$0xff]  ;;  %v36_v36 = vld [vmem:[%s2218_s1 + $0x60] sm:$0xff] }
   0xd   :  { %122 = vmatpush.msra.mxu1 %v76_v22  ;;  %168 = vmatpush.msra.mxu3 %v77_v23  ;;  %v71_v35 = vld [vmem:[%s2218_s1 + $0x178] sm:$0xff]  ;;  %v37_v37 = vld [vmem:[%s2218_s1 + $0x68] sm:$0xff]  ;;  %v68_v38 = vld [vmem:[%s2218_s1 + $0x160] sm:$0xff] }
   0xe   :  { %100 = vmatpush.msra.mxu0 %v42_v24  ;;  %146 = vmatpush.msra.mxu2 %v43_v25  ;;  %v69_v39 = vld [vmem:[%s2218_s1 + $0x168] sm:$0xff]  ;;  %v34_v40 = vld [vmem:[%s2218_s1 + $0x50] sm:$0xff]  ;;  %v35_v41 = vld [vmem:[%s2218_s1 + $0x58] sm:$0xff] }
   0xf   :  { %123 = vmatpush.msra.mxu1 %v74_v26  ;;  %169 = vmatpush.msra.mxu3 %v75_v27  ;;  %v66_v42 = vld [vmem:[%s2218_s1 + $0x150] sm:$0xff]  ;;  %v67_v43 = vld [vmem:[%s2218_s1 + $0x158] sm:$0xff]  ;;  %v32_v44 = vld [vmem:[%s2218_s1 + $0x40] sm:$0xff] }
  0x10   :  { %101 = vmatpush.msra.mxu0 %v40_v28  ;;  %147 = vmatpush.msra.mxu2 %v41_v29  ;;  %v33_v45 = vld [vmem:[%s2218_s1 + $0x48] sm:$0xff]  ;;  %v64_v46 = vld [vmem:[%s2218_s1 + $0x140] sm:$0xff]  ;;  %v30_v48 = vld [vmem:[%s2218_s1 + $0x30] sm:$0xff] }
  0x11   :  { %124 = vmatpush.msra.mxu1 %v72_v30  ;;  %170 = vmatpush.msra.mxu3 %v73_v31  ;;  %v65_v47 = vld [vmem:[%s2218_s1 + $0x148] sm:$0xff]  ;;  %v31_v49 = vld [vmem:[%s2218_s1 + $0x38] sm:$0xff]  ;;  %v62_v50 = vld [vmem:[%s2218_s1 + $0x130] sm:$0xff] }
  0x12   :  { %102 = vmatpush.msra.mxu0 %v38_v32  ;;  %148 = vmatpush.msra.mxu2 %v39_v33  ;;  %v63_v51 = vld [vmem:[%s2218_s1 + $0x138] sm:$0xff]  ;;  %v28_v52 = vld [vmem:[%s2218_s1 + $0x20] sm:$0xff]  ;;  %v29_v53 = vld [vmem:[%s2218_s1 + $0x28] sm:$0xff] }
  0x13   :  { %125 = vmatpush.msra.mxu1 %v70_v34  ;;  %171 = vmatpush.msra.mxu3 %v71_v35  ;;  %v60_v54 = vld [vmem:[%s2218_s1 + $0x120] sm:$0xff]  ;;  %v61_v55 = vld [vmem:[%s2218_s1 + $0x128] sm:$0xff]  ;;  %v26_v56 = vld [vmem:[%s2218_s1 + $0x10] sm:$0xff] }
  0x14   :  { %103 = vmatpush.msra.mxu0 %v36_v36  ;;  %149 = vmatpush.msra.mxu2 %v37_v37  ;;  %v27_v57 = vld [vmem:[%s2218_s1 + $0x18] sm:$0xff]  ;;  %v58_v58 = vld [vmem:[%s2218_s1 + $0x110] sm:$0xff]  ;;  %v24_v60 = vld [vmem:[%s2218_s1] sm:$0xff] }
  0x15   :  { %126 = vmatpush.msra.mxu1 %v68_v38  ;;  %172 = vmatpush.msra.mxu3 %v69_v39  ;;  %v59_v59 = vld [vmem:[%s2218_s1 + $0x118] sm:$0xff]  ;;  %v25_v61 = vld [vmem:[%s2218_s1 + $0x8] sm:$0xff]  ;;  %v20_v62 = vld [vmem:[%s2219_s0] sm:$0xff] }
  0x16   :  { %104 = vmatpush.msra.mxu0 %v34_v40  ;;  %150 = vmatpush.msra.mxu2 %v35_v41  ;;  %v56_v63 = vld [vmem:[%s2218_s1 + $0x100] sm:$0xff]  ;;  %v57_v0 = vld [vmem:[%s2218_s1 + $0x108] sm:$0xff]  ;;  %v205_v2 = vld [vmem:[%s2220_s3 + $0x78] sm:$0xff] }
  0x17   :  { %127 = vmatpush.msra.mxu1 %v66_v42  ;;  %173 = vmatpush.msra.mxu3 %v67_v43  ;;  %v21_v1 = vld [vmem:[%s2219_s0 + $0x8] sm:$0xff]  ;;  %v903_v3 = vld [vmem:[%s2220_s3 + $0x178] sm:$0xff]  ;;  %v204_v6 = vld [vmem:[%s2220_s3 + $0x70] sm:$0xff] }
  0x18   :  { %105 = vmatpush.msra.mxu0 %v32_v44  ;;  %151 = vmatpush.msra.mxu2 %v33_v45  ;;  %v221_v4 = vld [vmem:[%s2220_s3 + $0xf8] sm:$0xff]  ;;  %v902_v7 = vld [vmem:[%s2220_s3 + $0x170] sm:$0xff]  ;;  %v203_v10 = vld [vmem:[%s2220_s3 + $0x68] sm:$0xff] }
  0x19   :  { %128 = vmatpush.msra.mxu1 %v64_v46  ;;  %174 = vmatpush.msra.mxu3 %v65_v47  ;;  %v919_v5 = vld [vmem:[%s2220_s3 + $0x1f8] sm:$0xff]  ;;  %v220_v8 = vld [vmem:[%s2220_s3 + $0xf0] sm:$0xff]  ;;  %v901_v11 = vld [vmem:[%s2220_s3 + $0x168] sm:$0xff] }
  0x1a   :  { %106 = vmatpush.msra.mxu0 %v30_v48  ;;  %152 = vmatpush.msra.mxu2 %v31_v49  ;;  %v918_v9 = vld [vmem:[%s2220_s3 + $0x1f0] sm:$0xff]  ;;  %v202_v13 = vld [vmem:[%s2220_s3 + $0x60] sm:$0xff]  ;;  %v23_v15 = vld [vmem:[%s2219_s0 + $0x18] sm:$0xff] }
  0x1b   :  { %129 = vmatpush.msra.mxu1 %v62_v50  ;;  %175 = vmatpush.msra.mxu3 %v63_v51  ;;  %v22_v12 = vld [vmem:[%s2219_s0 + $0x10] sm:$0xff]  ;;  %v900_v14 = vld [vmem:[%s2220_s3 + $0x160] sm:$0xff]  ;;  %v201_v16 = vld [vmem:[%s2220_s3 + $0x58] sm:$0xff] }
  0x1c   :  { %107 = vmatpush.msra.mxu0 %v28_v52  ;;  %153 = vmatpush.msra.mxu2 %v29_v53  ;;  %v219_v17 = vld [vmem:[%s2220_s3 + $0xe8] sm:$0xff]  ;;  %v899_v18 = vld [vmem:[%s2220_s3 + $0x158] sm:$0xff]  ;;  %v200_v20 = vld [vmem:[%s2220_s3 + $0x50] sm:$0xff] }
  0x1d   :  { %130 = vmatpush.msra.mxu1 %v60_v54  ;;  %176 = vmatpush.msra.mxu3 %v61_v55  ;;  %v917_v19 = vld [vmem:[%s2220_s3 + $0x1e8] sm:$0xff]  ;;  %v218_v21 = vld [vmem:[%s2220_s3 + $0xe0] sm:$0xff]  ;;  %v898_v22 = vld [vmem:[%s2220_s3 + $0x150] sm:$0xff] }
  0x1e   :  { %108 = vmatpush.msra.mxu0 %v26_v56  ;;  %154 = vmatpush.msra.mxu2 %v27_v57  ;;  %v916_v23 = vld [vmem:[%s2220_s3 + $0x1e0] sm:$0xff]  ;;  %v199_v24 = vld [vmem:[%s2220_s3 + $0x48] sm:$0xff]  ;;  %v217_v25 = vld [vmem:[%s2220_s3 + $0xd8] sm:$0xff] }
  0x1f   :  { %131 = vmatpush.msra.mxu1 %v58_v58  ;;  %177 = vmatpush.msra.mxu3 %v59_v59  ;;  %v897_v26 = vld [vmem:[%s2220_s3 + $0x148] sm:$0xff]  ;;  %v915_v27 = vld [vmem:[%s2220_s3 + $0x1d8] sm:$0xff]  ;;  %v198_v28 = vld [vmem:[%s2220_s3 + $0x40] sm:$0xff] }
  0x20   :  { %109 = vmatpush.msra.mxu0 %v24_v60  ;;  %155 = vmatpush.msra.mxu2 %v25_v61  ;;  %v216_v29 = vld [vmem:[%s2220_s3 + $0xd0] sm:$0xff]  ;;  %v896_v30 = vld [vmem:[%s2220_s3 + $0x140] sm:$0xff]  ;;  %v197_v32 = vld [vmem:[%s2220_s3 + $0x38] sm:$0xff] }
  0x21   :  { %110 = vmatmul.f32.vlgmr.msra.gmra.mxu0 %v20_v62  ;;  %156 = vmatmul.f32.vlgmr.msra.gmra.mxu2 %v20_v62  ;;  %v914_v31 = vld [vmem:[%s2220_s3 + $0x1d0] sm:$0xff]  ;;  %v215_v33 = vld [vmem:[%s2220_s3 + $0xc8] sm:$0xff]  ;;  %v895_v34 = vld [vmem:[%s2220_s3 + $0x138] sm:$0xff] }
  0x22   :  { %132 = vmatpush.msra.mxu1 %v56_v63  ;;  %178 = vmatpush.msra.mxu3 %v57_v0  ;;  %v913_v35 = vld [vmem:[%s2220_s3 + $0x1c8] sm:$0xff]  ;;  %v196_v36 = vld [vmem:[%s2220_s3 + $0x30] sm:$0xff]  ;;  %v214_v37 = vld [vmem:[%s2220_s3 + $0xc0] sm:$0xff] }
  0x23   :  { %133 = vmatmul.f32.vlgmr.msra.gmra.mxu1 %v21_v1  ;;  %179 = vmatmul.f32.vlgmr.msra.gmra.mxu3 %v21_v1  ;;  %v894_v38 = vld [vmem:[%s2220_s3 + $0x130] sm:$0xff]  ;;  %v912_v39 = vld [vmem:[%s2220_s3 + $0x1c0] sm:$0xff]  ;;  %v195_v40 = vld [vmem:[%s2220_s3 + $0x28] sm:$0xff] }
  0x24   :  { %226 = vmatpush.msrb.mxu0 %v205_v2  ;;  %312 = vmatpush.msrb.mxu2 %v903_v3  ;;  %v213_v41 = vld [vmem:[%s2220_s3 + $0xb8] sm:$0xff]  ;;  %v893_v42 = vld [vmem:[%s2220_s3 + $0x128] sm:$0xff]  ;;  %v194_v44 = vld [vmem:[%s2220_s3 + $0x20] sm:$0xff] }
  0x25   :  { %246 = vmatpush.msrb.mxu1 %v221_v4  ;;  %332 = vmatpush.msrb.mxu3 %v919_v5  ;;  %v911_v43 = vld [vmem:[%s2220_s3 + $0x1b8] sm:$0xff]  ;;  %v212_v45 = vld [vmem:[%s2220_s3 + $0xb0] sm:$0xff]  ;;  %v892_v46 = vld [vmem:[%s2220_s3 + $0x120] sm:$0xff] }
  0x26   :  { %227 = vmatpush.msrb.mxu0 %v204_v6  ;;  %313 = vmatpush.msrb.mxu2 %v902_v7  ;;  %v910_v47 = vld [vmem:[%s2220_s3 + $0x1b0] sm:$0xff]  ;;  %v193_v48 = vld [vmem:[%s2220_s3 + $0x18] sm:$0xff]  ;;  %v211_v49 = vld [vmem:[%s2220_s3 + $0xa8] sm:$0xff] }
  0x27   :  { %247 = vmatpush.msrb.mxu1 %v220_v8  ;;  %333 = vmatpush.msrb.mxu3 %v918_v9  ;;  %v891_v50 = vld [vmem:[%s2220_s3 + $0x118] sm:$0xff]  ;;  %v909_v51 = vld [vmem:[%s2220_s3 + $0x1a8] sm:$0xff]  ;;  %v192_v52 = vld [vmem:[%s2220_s3 + $0x10] sm:$0xff] }
  0x28   :  { %228 = vmatpush.msrb.mxu0 %v203_v10  ;;  %314 = vmatpush.msrb.mxu2 %v901_v11  ;;  %v210_v53 = vld [vmem:[%s2220_s3 + $0xa0] sm:$0xff]  ;;  %v890_v54 = vld [vmem:[%s2220_s3 + $0x110] sm:$0xff]  ;;  %v191_v56 = vld [vmem:[%s2220_s3 + $0x8] sm:$0xff] }
  0x29   :  { %159 = vmatmul.f32.gmra.mxu2 %v22_v12  ;;  %113 = vmatmul.f32.gmra.mxu0 %v22_v12  ;;  %v908_v55 = vld [vmem:[%s2220_s3 + $0x1a0] sm:$0xff]  ;;  %v209_v57 = vld [vmem:[%s2220_s3 + $0x98] sm:$0xff]  ;;  %v889_v58 = vld [vmem:[%s2220_s3 + $0x108] sm:$0xff] }
  0x2a   :  { %229 = vmatpush.msrb.mxu0 %v202_v13  ;;  %315 = vmatpush.msrb.mxu2 %v900_v14  ;;  %v907_v59 = vld [vmem:[%s2220_s3 + $0x198] sm:$0xff]  ;;  %v190_v60 = vld [vmem:[%s2220_s3] sm:$0xff]  ;;  %v208_v61 = vld [vmem:[%s2220_s3 + $0x90] sm:$0xff] }
  0x2b   :  { %182 = vmatmul.f32.gmra.mxu3 %v23_v15  ;;  %136 = vmatmul.f32.gmra.mxu1 %v23_v15  ;;  %v936_v62 = vld [vmem:[%s2220_s3 + $0x278] sm:$0xff]  ;;  %v888_v63 = vld [vmem:[%s2220_s3 + $0x100] sm:$0xff]  ;;  %v207_v1 = vld [vmem:[%s2220_s3 + $0x88] sm:$0xff] }
  0x2c   :  { %230 = vmatpush.msrb.mxu0 %v201_v16  ;;  %248 = vmatpush.msrb.mxu1 %v219_v17  ;;  %v969_v0 = vld [vmem:[%s2220_s3 + $0x378] sm:$0xff]  ;;  %v935_v2 = vld [vmem:[%s2220_s3 + $0x270] sm:$0xff]  ;;  %v206_v5 = vld [vmem:[%s2220_s3 + $0x80] sm:$0xff] }
  0x2d   :  { %316 = vmatpush.msrb.mxu2 %v899_v18  ;;  %334 = vmatpush.msrb.mxu3 %v917_v19  ;;  %v906_v3 = vld [vmem:[%s2220_s3 + $0x190] sm:$0xff]  ;;  %v934_v6 = vld [vmem:[%s2220_s3 + $0x268] sm:$0xff]  ;;  %v952_v8 = vld [vmem:[%s2220_s3 + $0x2f8] sm:$0xff] }
  0x2e   :  { %231 = vmatpush.msrb.mxu0 %v200_v20  ;;  %249 = vmatpush.msrb.mxu1 %v218_v21  ;;  %v968_v4 = vld [vmem:[%s2220_s3 + $0x370] sm:$0xff]  ;;  %v905_v7 = vld [vmem:[%s2220_s3 + $0x188] sm:$0xff]  ;;  %v933_v10 = vld [vmem:[%s2220_s3 + $0x260] sm:$0xff] }
  0x2f   :  { %317 = vmatpush.msrb.mxu2 %v898_v22  ;;  %335 = vmatpush.msrb.mxu3 %v916_v23  ;;  %v967_v9 = vld [vmem:[%s2220_s3 + $0x368] sm:$0xff]  ;;  %v904_v11 = vld [vmem:[%s2220_s3 + $0x180] sm:$0xff]  ;;  %v951_v12 = vld [vmem:[%s2220_s3 + $0x2f0] sm:$0xff] }
  0x30   :  { %232 = vmatpush.msrb.mxu0 %v199_v24  ;;  %250 = vmatpush.msrb.mxu1 %v217_v25  ;;  %v966_v13 = vld [vmem:[%s2220_s3 + $0x360] sm:$0xff]  ;;  %v932_v14 = vld [vmem:[%s2220_s3 + $0x258] sm:$0xff]  ;;  %v950_v16 = vld [vmem:[%s2220_s3 + $0x2e8] sm:$0xff] }
  0x31   :  { %318 = vmatpush.msrb.mxu2 %v897_v26  ;;  %336 = vmatpush.msrb.mxu3 %v915_v27  ;;  %v985_v15 = vld [vmem:[%s2220_s3 + $0x3f8] sm:$0xff]  ;;  %v931_v18 = vld [vmem:[%s2220_s3 + $0x250] sm:$0xff]  ;;  %v949_v20 = vld [vmem:[%s2220_s3 + $0x2e0] sm:$0xff] }
  0x32   :  { %233 = vmatpush.msrb.mxu0 %v198_v28  ;;  %251 = vmatpush.msrb.mxu1 %v216_v29  ;;  %v965_v17 = vld [vmem:[%s2220_s3 + $0x358] sm:$0xff]  ;;  %v984_v19 = vld [vmem:[%s2220_s3 + $0x3f0] sm:$0xff]  ;;  %v930_v22 = vld [vmem:[%s2220_s3 + $0x248] sm:$0xff] }
  0x33   :  { %319 = vmatpush.msrb.mxu2 %v896_v30  ;;  %337 = vmatpush.msrb.mxu3 %v914_v31  ;;  %v964_v21 = vld [vmem:[%s2220_s3 + $0x350] sm:$0xff]  ;;  %v983_v23 = vld [vmem:[%s2220_s3 + $0x3e8] sm:$0xff]  ;;  %v948_v24 = vld [vmem:[%s2220_s3 + $0x2d8] sm:$0xff] }
  0x34   :  { %234 = vmatpush.msrb.mxu0 %v197_v32  ;;  %252 = vmatpush.msrb.mxu1 %v215_v33  ;;  %v963_v25 = vld [vmem:[%s2220_s3 + $0x348] sm:$0xff]  ;;  %v929_v26 = vld [vmem:[%s2220_s3 + $0x240] sm:$0xff]  ;;  %v947_v28 = vld [vmem:[%s2220_s3 + $0x2d0] sm:$0xff] }
  0x35   :  { %320 = vmatpush.msrb.mxu2 %v895_v34  ;;  %338 = vmatpush.msrb.mxu3 %v913_v35  ;;  %v982_v27 = vld [vmem:[%s2220_s3 + $0x3e0] sm:$0xff]  ;;  %v928_v30 = vld [vmem:[%s2220_s3 + $0x238] sm:$0xff]  ;;  %v946_v32 = vld [vmem:[%s2220_s3 + $0x2c8] sm:$0xff] }
  0x36   :  { %235 = vmatpush.msrb.mxu0 %v196_v36  ;;  %253 = vmatpush.msrb.mxu1 %v214_v37  ;;  %v962_v29 = vld [vmem:[%s2220_s3 + $0x340] sm:$0xff]  ;;  %v981_v31 = vld [vmem:[%s2220_s3 + $0x3d8] sm:$0xff]  ;;  %v927_v34 = vld [vmem:[%s2220_s3 + $0x230] sm:$0xff] }
  0x37   :  { %321 = vmatpush.msrb.mxu2 %v894_v38  ;;  %339 = vmatpush.msrb.mxu3 %v912_v39  ;;  %v961_v33 = vld [vmem:[%s2220_s3 + $0x338] sm:$0xff]  ;;  %v980_v35 = vld [vmem:[%s2220_s3 + $0x3d0] sm:$0xff]  ;;  %v945_v36 = vld [vmem:[%s2220_s3 + $0x2c0] sm:$0xff] }
  0x38   :  { %236 = vmatpush.msrb.mxu0 %v195_v40  ;;  %254 = vmatpush.msrb.mxu1 %v213_v41  ;;  %v960_v37 = vld [vmem:[%s2220_s3 + $0x330] sm:$0xff]  ;;  %v926_v38 = vld [vmem:[%s2220_s3 + $0x228] sm:$0xff]  ;;  %v944_v40 = vld [vmem:[%s2220_s3 + $0x2b8] sm:$0xff] }
  0x39   :  { %322 = vmatpush.msrb.mxu2 %v893_v42  ;;  %340 = vmatpush.msrb.mxu3 %v911_v43  ;;  %v979_v39 = vld [vmem:[%s2220_s3 + $0x3c8] sm:$0xff]  ;;  %v925_v42 = vld [vmem:[%s2220_s3 + $0x220] sm:$0xff] }
  0x3a   :  { %237 = vmatpush.msrb.mxu0 %v194_v44  ;;  %255 = vmatpush.msrb.mxu1 %v212_v45  ;;  %v959_v41 = vld [vmem:[%s2220_s3 + $0x328] sm:$0xff]  ;;  %v978_v43 = vld [vmem:[%s2220_s3 + $0x3c0] sm:$0xff]  ;;  %v924_v44 = vld [vmem:[%s2220_s3 + $0x218] sm:$0xff] }
  0x3b   :  { %323 = vmatpush.msrb.mxu2 %v892_v46  ;;  %341 = vmatpush.msrb.mxu3 %v910_v47  ;;  %v943_v45 = vld [vmem:[%s2220_s3 + $0x2b0] sm:$0xff]  ;;  %v958_v46 = vld [vmem:[%s2220_s3 + $0x320] sm:$0xff]  ;;  %v977_v47 = vld [vmem:[%s2220_s3 + $0x3b8] sm:$0xff] }
  0x3c   :  { %238 = vmatpush.msrb.mxu0 %v193_v48  ;;  %256 = vmatpush.msrb.mxu1 %v211_v49  ;;  %v923_v48 = vld [vmem:[%s2220_s3 + $0x210] sm:$0xff]  ;;  %v942_v49 = vld [vmem:[%s2220_s3 + $0x2a8] sm:$0xff] }
  0x3d   :  { %324 = vmatpush.msrb.mxu2 %v891_v50  ;;  %342 = vmatpush.msrb.mxu3 %v909_v51  ;;  %v957_v50 = vld [vmem:[%s2220_s3 + $0x318] sm:$0xff]  ;;  %v976_v51 = vld [vmem:[%s2220_s3 + $0x3b0] sm:$0xff] }
  0x3e   :  { %239 = vmatpush.msrb.mxu0 %v192_v52  ;;  %257 = vmatpush.msrb.mxu1 %v210_v53  ;;  %v922_v52 = vld [vmem:[%s2220_s3 + $0x208] sm:$0xff]  ;;  %v941_v53 = vld [vmem:[%s2220_s3 + $0x2a0] sm:$0xff] }
  0x3f   :  { %325 = vmatpush.msrb.mxu2 %v890_v54  ;;  %343 = vmatpush.msrb.mxu3 %v908_v55  ;;  %v956_v54 = vld [vmem:[%s2220_s3 + $0x310] sm:$0xff]  ;;  %v975_v55 = vld [vmem:[%s2220_s3 + $0x3a8] sm:$0xff] }
  0x40   :  { %240 = vmatpush.msrb.mxu0 %v191_v56  ;;  %258 = vmatpush.msrb.mxu1 %v209_v57  ;;  %v921_v56 = vld [vmem:[%s2220_s3 + $0x200] sm:$0xff]  ;;  %v940_v57 = vld [vmem:[%s2220_s3 + $0x298] sm:$0xff] }
  0x41   :  { %326 = vmatpush.msrb.mxu2 %v889_v58  ;;  %344 = vmatpush.msrb.mxu3 %v907_v59  ;;  %v955_v58 = vld [vmem:[%s2220_s3 + $0x308] sm:$0xff]  ;;  %v974_v59 = vld [vmem:[%s2220_s3 + $0x3a0] sm:$0xff] }
  0x42   :  { %241 = vmatpush.msrb.mxu0 %v190_v60  ;;  %259 = vmatpush.msrb.mxu1 %v208_v61  ;;  %v939_v60 = vld [vmem:[%s2220_s3 + $0x290] sm:$0xff]  ;;  %v954_v61 = vld [vmem:[%s2220_s3 + $0x300] sm:$0xff] }
  0x43   :  { %327 = vmatpush.msrb.mxu2 %v888_v63  ;;  %345 = vmatpush.msrb.mxu3 %v906_v3  ;;  %v938_v63 = vld [vmem:[%s2220_s3 + $0x288] sm:$0xff]  ;;  %v970_v3 = vld [vmem:[%s2220_s3 + $0x380] sm:$0xff] }
  0x44   :  { %400 = vmatpush.msra.mxu0 %v936_v62  ;;  %260 = vmatpush.msrb.mxu1 %v207_v1  ;;  %v973_v62 = vld [vmem:[%s2220_s3 + $0x398] sm:$0xff]  ;;  %v937_v1 = vld [vmem:[%s2220_s3 + $0x280] sm:$0xff] }
  0x45   :  { %488 = vmatpush.msra.mxu2 %v969_v0  ;;  %346 = vmatpush.msrb.mxu3 %v905_v7  ;;  %v972_v0 = vld [vmem:[%s2220_s3 + $0x390] sm:$0xff] }
  0x46   :  { %401 = vmatpush.msra.mxu0 %v935_v2  ;;  %261 = vmatpush.msrb.mxu1 %v206_v5  ;;  %v971_v2 = vld [vmem:[%s2220_s3 + $0x388] sm:$0xff] }
  0x47   :  { %489 = vmatpush.msra.mxu2 %v968_v4  ;;  %347 = vmatpush.msrb.mxu3 %v904_v11  ;;  %v1762_v4 = vld [vmem:[%s2222_s2] sm:$0x3] }
  0x48   :  { %402 = vmatpush.msra.mxu0 %v934_v6  ;;  %420 = vmatpush.msra.mxu1 %v952_v8  ;;  %v90_v5 = vperm.slane %v1762_v4, 0 }
  0x49   :  { %490 = vmatpush.msra.mxu2 %v967_v9  ;;  %508 = vmatpush.msra.mxu3 %v985_v15 }
  0x4a   :  { %403 = vmatpush.msra.mxu0 %v933_v10  ;;  %421 = vmatpush.msra.mxu1 %v951_v12  ;;  %v91_v10 = vperm.slane %v1762_v4, 1  ;;  %v1002_v12 = vld [vmem:[%s2220_s3 + $0x478] sm:$0xff]  ;;  %v1037_v4 = vld [vmem:[%s2220_s3 + $0x588] sm:$0xff] }
  0x4b   :  { %491 = vmatpush.msra.mxu2 %v966_v13  ;;  %509 = vmatpush.msra.mxu3 %v984_v19 }
  0x4c   :  { %404 = vmatpush.msra.mxu0 %v932_v14  ;;  %422 = vmatpush.msra.mxu1 %v950_v16  ;;  %v1001_v16 = vld [vmem:[%s2220_s3 + $0x470] sm:$0xff] }
  0x4d   :  { %492 = vmatpush.msra.mxu2 %v965_v17  ;;  %510 = vmatpush.msra.mxu3 %v983_v23  ;;  %v1035_v17 = vld [vmem:[%s2220_s3 + $0x578] sm:$0xff]  ;;  %v999_v23 = vld [vmem:[%s2220_s3 + $0x460] sm:$0xff] }
  0x4e   :  { %405 = vmatpush.msra.mxu0 %v931_v18  ;;  %423 = vmatpush.msra.mxu1 %v949_v20  ;;  %v1000_v20 = vld [vmem:[%s2220_s3 + $0x468] sm:$0xff] }
  0x4f   :  { %493 = vmatpush.msra.mxu2 %v964_v21  ;;  %511 = vmatpush.msra.mxu3 %v982_v27  ;;  %v1034_v21 = vld [vmem:[%s2220_s3 + $0x570] sm:$0xff] }
  0x50   :  { %406 = vmatpush.msra.mxu0 %v930_v22  ;;  %424 = vmatpush.msra.mxu1 %v948_v24  ;;  %v1018_v24 = vld [vmem:[%s2220_s3 + $0x4f8] sm:$0xff]  ;;  %v1017_v27 = vld [vmem:[%s2220_s3 + $0x4f0] sm:$0xff] }
  0x51   :  { %494 = vmatpush.msra.mxu2 %v963_v25  ;;  %512 = vmatpush.msra.mxu3 %v981_v31  ;;  %v1033_v25 = vld [vmem:[%s2220_s3 + $0x568] sm:$0xff]  ;;  %v1051_v31 = vld [vmem:[%s2220_s3 + $0x5f8] sm:$0xff] }
  0x52   :  { %407 = vmatpush.msra.mxu0 %v929_v26  ;;  %425 = vmatpush.msra.mxu1 %v947_v28 }
  0x53   :  { %495 = vmatpush.msra.mxu2 %v962_v29  ;;  %513 = vmatpush.msra.mxu3 %v980_v35  ;;  %v998_v29 = vld [vmem:[%s2220_s3 + $0x458] sm:$0xff] }
  0x54   :  { %408 = vmatpush.msra.mxu0 %v928_v30  ;;  %426 = vmatpush.msra.mxu1 %v946_v32  ;;  %v1032_v30 = vld [vmem:[%s2220_s3 + $0x560] sm:$0xff]  ;;  %v1031_v35 = vld [vmem:[%s2220_s3 + $0x558] sm:$0xff] }
  0x55   :  { %496 = vmatpush.msra.mxu2 %v961_v33  ;;  %514 = vmatpush.msra.mxu3 %v979_v39  ;;  %v997_v33 = vld [vmem:[%s2220_s3 + $0x450] sm:$0xff] }
  0x56   :  { %409 = vmatpush.msra.mxu0 %v927_v34  ;;  %427 = vmatpush.msra.mxu1 %v945_v36  ;;  %v1016_v34 = vld [vmem:[%s2220_s3 + $0x4e8] sm:$0xff]  ;;  %v1050_v36 = vld [vmem:[%s2220_s3 + $0x5f0] sm:$0xff] }
  0x57   :  { %497 = vmatpush.msra.mxu2 %v960_v37  ;;  %515 = vmatpush.msra.mxu3 %v978_v43  ;;  %v996_v37 = vld [vmem:[%s2220_s3 + $0x448] sm:$0xff]  ;;  %v1030_v39 = vld [vmem:[%s2220_s3 + $0x550] sm:$0xff]  ;;  %v1014_v43 = vld [vmem:[%s2220_s3 + $0x4d8] sm:$0xff] }
  0x58   :  { %410 = vmatpush.msra.mxu0 %v926_v38  ;;  %428 = vmatpush.msra.mxu1 %v944_v40  ;;  %v1015_v38 = vld [vmem:[%s2220_s3 + $0x4e0] sm:$0xff]  ;;  %v1049_v40 = vld [vmem:[%s2220_s3 + $0x5e8] sm:$0xff] }
  0x59   :  { %498 = vmatpush.msra.mxu2 %v959_v41  ;;  %516 = vmatpush.msra.mxu3 %v977_v47  ;;  %v995_v41 = vld [vmem:[%s2220_s3 + $0x440] sm:$0xff]  ;;  %v1013_v47 = vld [vmem:[%s2220_s3 + $0x4d0] sm:$0xff] }
  0x5a   :  { %411 = vmatpush.msra.mxu0 %v925_v42  ;;  %429 = vmatpush.msra.mxu1 %v943_v45  ;;  %v1048_v45 = vld [vmem:[%s2220_s3 + $0x5e0] sm:$0xff] }
  0x5b   :  { %499 = vmatpush.msra.mxu2 %v958_v46  ;;  %517 = vmatpush.msra.mxu3 %v976_v51  ;;  %v994_v46 = vld [vmem:[%s2220_s3 + $0x438] sm:$0xff]  ;;  %v993_v51 = vld [vmem:[%s2220_s3 + $0x430] sm:$0xff] }
  0x5c   :  { %412 = vmatpush.msra.mxu0 %v924_v44  ;;  %430 = vmatpush.msra.mxu1 %v942_v49  ;;  %v1029_v44 = vld [vmem:[%s2220_s3 + $0x548] sm:$0xff]  ;;  %v1028_v49 = vld [vmem:[%s2220_s3 + $0x540] sm:$0xff] }
  0x5d   :  { %500 = vmatpush.msra.mxu2 %v957_v50  ;;  %518 = vmatpush.msra.mxu3 %v975_v55  ;;  %v1047_v50 = vld [vmem:[%s2220_s3 + $0x5d8] sm:$0xff]  ;;  %v992_v55 = vld [vmem:[%s2220_s3 + $0x428] sm:$0xff] }
  0x5e   :  { %413 = vmatpush.msra.mxu0 %v923_v48  ;;  %431 = vmatpush.msra.mxu1 %v941_v53  ;;  %v1027_v53 = vld [vmem:[%s2220_s3 + $0x538] sm:$0xff] }
  0x5f   :  { %501 = vmatpush.msra.mxu2 %v956_v54  ;;  %519 = vmatpush.msra.mxu3 %v974_v59  ;;  %v1046_v54 = vld [vmem:[%s2220_s3 + $0x5d0] sm:$0xff]  ;;  %v991_v59 = vld [vmem:[%s2220_s3 + $0x420] sm:$0xff] }
  0x60   :  { %414 = vmatpush.msra.mxu0 %v922_v52  ;;  %432 = vmatpush.msra.mxu1 %v940_v57  ;;  %v1012_v52 = vld [vmem:[%s2220_s3 + $0x4c8] sm:$0xff]  ;;  %v1026_v57 = vld [vmem:[%s2220_s3 + $0x530] sm:$0xff] }
  0x61   :  { %502 = vmatpush.msra.mxu2 %v955_v58  ;;  %520 = vmatpush.msra.mxu3 %v973_v62  ;;  %v1045_v58 = vld [vmem:[%s2220_s3 + $0x5c8] sm:$0xff]  ;;  %v1044_v62 = vld [vmem:[%s2220_s3 + $0x5c0] sm:$0xff] }
  0x62   :  { %415 = vmatpush.msra.mxu0 %v921_v56  ;;  %433 = vmatpush.msra.mxu1 %v939_v60  ;;  %v1011_v56 = vld [vmem:[%s2220_s3 + $0x4c0] sm:$0xff]  ;;  %v1010_v60 = vld [vmem:[%s2220_s3 + $0x4b8] sm:$0xff] }
  0x63   :  { %503 = vmatpush.msra.mxu2 %v954_v61  ;;  %521 = vmatpush.msra.mxu3 %v972_v0  ;;  %v1025_v61 = vld [vmem:[%s2220_s3 + $0x528] sm:$0xff]  ;;  %v1009_v0 = vld [vmem:[%s2220_s3 + $0x4b0] sm:$0xff] }
  0x64   :  { %434 = vmatpush.msra.mxu1 %v938_v63  ;;  %v990_v63 = vld [vmem:[%s2220_s3 + $0x418] sm:$0xff] }
  0x65   :  { %522 = vmatpush.msra.mxu3 %v971_v2  ;;  %v1043_v2 = vld [vmem:[%s2220_s3 + $0x5b8] sm:$0xff] }
  0x66   :  { %435 = vmatpush.msra.mxu1 %v937_v1  ;;  %v1024_v1 = vld [vmem:[%s2220_s3 + $0x520] sm:$0xff] }
  0x67   :  { %523 = vmatpush.msra.mxu3 %v970_v3  ;;  %v989_v3 = vld [vmem:[%s2220_s3 + $0x410] sm:$0xff] }
  0x9e   :  { %v111_v6 = vpop.f32.mrf.mxu0 }
  0x9f   :  { %v112_v7 = vadd.f32 %v111_v6, %v90_v5  ;;  %v1008_v6 = vld [vmem:[%s2220_s3 + $0x4a8] sm:$0xff] }
  0xa0   :  { %v134_v8 = vpop.f32.mrf.mxu1 }
  0xa1   :  { %v135_v9 = vadd.f32 %v134_v8, %v112_v7  ;;  %v1023_v7 = vld [vmem:[%s2220_s3 + $0x518] sm:$0xff]  ;;  %v1042_v8 = vld [vmem:[%s2220_s3 + $0x5b0] sm:$0xff] }
  0xa3   :  { %v186_v11 = vmax.f32 %v135_v9, 0.0  ;;  %v988_v9 = vld [vmem:[%s2220_s3 + $0x408] sm:$0xff] }
  0xa4   :  { %v157_v13 = vpop.f32.mrf.mxu2 }
  0xa5   :  { %v158_v14 = vadd.f32 %v157_v13, %v91_v10  ;;  %242 = vmatmul.f32.vlgmr.msrb.gmra.mxu0 %v186_v11  ;;  %v308_v15 = vrot.slane %v186_v11, 2  ;;  %v396_v28 = vrot.slane %v186_v11, 4  ;;  %v484_v32 = vrot.slane %v186_v11, 6  ;;  %v1007_v11 = vld [vmem:[%s2220_s3 + $0x4a0] sm:$0xff]  ;;  %v1041_v13 = vld [vmem:[%s2220_s3 + $0x5a8] sm:$0xff] }
  0xa6   :  { %572 = vmatpush.msrb.mxu0 %v1002_v12  ;;  %v180_v18 = vpop.f32.mrf.mxu3  ;;  %v1022_v12 = vld [vmem:[%s2220_s3 + $0x510] sm:$0xff] }
  0xa7   :  { %v181_v19 = vadd.f32 %v180_v18, %v158_v14  ;;  %328 = vmatmul.f32.vlgmr.msrb.gmra.mxu2 %v308_v15  ;;  %v987_v14 = vld [vmem:[%s2220_s3 + $0x400] sm:$0xff]  ;;  %v1006_v15 = vld [vmem:[%s2220_s3 + $0x498] sm:$0xff] }
  0xa8   :  { %573 = vmatpush.msrb.mxu0 %v1001_v16  ;;  %662 = vmatpush.msrb.mxu2 %v1035_v17  ;;  %v114_v16 = vpop.f32.mrf.mxu0  ;;  %v1021_v17 = vld [vmem:[%s2220_s3 + $0x508] sm:$0xff]  ;;  %v1040_v18 = vld [vmem:[%s2220_s3 + $0x5a0] sm:$0xff] }
  0xa9   :  { %v187_v22 = vmax.f32 %v181_v19, 0.0  ;;  %v1068_v19 = vld [vmem:[%s2220_s3 + $0x678] sm:$0xff] }
  0xaa   :  { %574 = vmatpush.msrb.mxu0 %v1000_v20  ;;  %663 = vmatpush.msrb.mxu2 %v1034_v21  ;;  %v1005_v20 = vld [vmem:[%s2220_s3 + $0x490] sm:$0xff] }
  0xab   :  { %262 = vmatmul.f32.vlgmr.msrb.gmra.mxu1 %v187_v22  ;;  %v309_v26 = vrot.slane %v187_v22, 2  ;;  %v397_v42 = vrot.slane %v187_v22, 4  ;;  %v485_v48 = vrot.slane %v187_v22, 6  ;;  %v1020_v22 = vld [vmem:[%s2220_s3 + $0x500] sm:$0xff] }
  0xac   :  { %575 = vmatpush.msrb.mxu0 %v999_v23  ;;  %592 = vmatpush.msrb.mxu1 %v1018_v24  ;;  %v160_v21 = vpop.f32.mrf.mxu2  ;;  %v1039_v23 = vld [vmem:[%s2220_s3 + $0x598] sm:$0xff]  ;;  %v115_v24 = vadd.f32 %v114_v16, %v90_v5  ;;  %v1038_v5 = vld [vmem:[%s2220_s3 + $0x590] sm:$0xff]  ;;  %v1090_v16 = vld [vmem:[%s2220_s3 + $0x720] sm:$0xff] }
  0xad   :  { %664 = vmatpush.msrb.mxu2 %v1033_v25  ;;  %348 = vmatmul.f32.vlgmr.msrb.gmra.mxu3 %v309_v26  ;;  %v1067_v25 = vld [vmem:[%s2220_s3 + $0x670] sm:$0xff]  ;;  %v1101_v26 = vld [vmem:[%s2220_s3 + $0x778] sm:$0xff] }
  0xae   :  { %416 = vmatmul.f32.vlgmr.msra.gmra.mxu0 %v396_v28  ;;  %593 = vmatpush.msrb.mxu1 %v1017_v27  ;;  %v137_v27 = vpop.f32.mrf.mxu1  ;;  %v1004_v28 = vld [vmem:[%s2220_s3 + $0x488] sm:$0xff] }
  0xaf   :  { %576 = vmatpush.msrb.mxu0 %v998_v29  ;;  %665 = vmatpush.msrb.mxu2 %v1032_v30  ;;  %v161_v29 = vadd.f32 %v160_v21, %v91_v10  ;;  %v1066_v30 = vld [vmem:[%s2220_s3 + $0x668] sm:$0xff]  ;;  %v1065_v10 = vld [vmem:[%s2220_s3 + $0x660] sm:$0xff]  ;;  %v1108_v21 = vld [vmem:[%s2220_s3 + $0x7b0] sm:$0xff] }
  0xb0   :  { %682 = vmatpush.msrb.mxu3 %v1051_v31  ;;  %504 = vmatmul.f32.vlgmr.msra.gmra.mxu2 %v484_v32  ;;  %v1100_v31 = vld [vmem:[%s2220_s3 + $0x770] sm:$0xff]  ;;  %v183_v32 = vpop.f32.mrf.mxu3 }
  0xb1   :  { %577 = vmatpush.msrb.mxu0 %v997_v33  ;;  %594 = vmatpush.msrb.mxu1 %v1016_v34  ;;  %v138_v33 = vadd.f32 %v137_v27, %v115_v24  ;;  %v1003_v34 = vld [vmem:[%s2220_s3 + $0x480] sm:$0xff]  ;;  %v1088_v24 = vld [vmem:[%s2220_s3 + $0x710] sm:$0xff]  ;;  %v1072_v27 = vld [vmem:[%s2220_s3 + $0x698] sm:$0xff] }
  0xb2   :  { %666 = vmatpush.msrb.mxu2 %v1031_v35  ;;  %683 = vmatpush.msrb.mxu3 %v1050_v36  ;;  %v1084_v35 = vld [vmem:[%s2220_s3 + $0x6f8] sm:$0xff]  ;;  %v184_v36 = vadd.f32 %v183_v32, %v161_v29  ;;  %v1071_v29 = vld [vmem:[%s2220_s3 + $0x690] sm:$0xff] }
  0xb3   :  { %578 = vmatpush.msrb.mxu0 %v996_v37  ;;  %595 = vmatpush.msrb.mxu1 %v1015_v38  ;;  %v1099_v37 = vld [vmem:[%s2220_s3 + $0x768] sm:$0xff]  ;;  %v1036_v38 = vld [vmem:[%s2220_s3 + $0x580] sm:$0xff]  ;;  %v1105_v32 = vld [vmem:[%s2220_s3 + $0x798] sm:$0xff] }
  0xb4   :  { %667 = vmatpush.msrb.mxu2 %v1030_v39  ;;  %684 = vmatpush.msrb.mxu3 %v1049_v40  ;;  %v1064_v39 = vld [vmem:[%s2220_s3 + $0x658] sm:$0xff]  ;;  %v1083_v40 = vld [vmem:[%s2220_s3 + $0x6f0] sm:$0xff] }
  0xb5   :  { %436 = vmatmul.f32.vlgmr.msra.gmra.mxu1 %v397_v42  ;;  %579 = vmatpush.msrb.mxu0 %v995_v41  ;;  %v1996_v41 = vmax.f32 %v138_v33, 0.0  ;;  %v1098_v42 = vld [vmem:[%s2220_s3 + $0x760] sm:$0xff]  ;;  %v1070_v33 = vld [vmem:[%s2220_s3 + $0x688] sm:$0xff] }
  0xb6   :  { %596 = vmatpush.msrb.mxu1 %v1014_v43  ;;  %668 = vmatpush.msrb.mxu2 %v1029_v44  ;;  %v1117_v43 = vld [vmem:[%s2220_s3 + $0x7f8] sm:$0xff]  ;;  %v1082_v44 = vld [vmem:[%s2220_s3 + $0x6e8] sm:$0xff] }
  0xb7   :  { %685 = vmatpush.msrb.mxu3 %v1048_v45  ;;  %580 = vmatpush.msrb.mxu0 %v994_v46  ;;  %v2007_v45 = vmax.f32 %v184_v36, 0.0  ;;  %v1063_v46 = vld [vmem:[%s2220_s3 + $0x650] sm:$0xff] }
  0xb8   :  { %524 = vmatmul.f32.vlgmr.msra.gmra.mxu3 %v485_v48  ;;  %597 = vmatpush.msrb.mxu1 %v1013_v47  ;;  %v1097_v47 = vld [vmem:[%s2220_s3 + $0x758] sm:$0xff]  ;;  %v1116_v48 = vld [vmem:[%s2220_s3 + $0x7f0] sm:$0xff] }
  0xb9   :  { %669 = vmatpush.msrb.mxu2 %v1028_v49  ;;  %686 = vmatpush.msrb.mxu3 %v1047_v50  ;;  %v1062_v49 = vld [vmem:[%s2220_s3 + $0x648] sm:$0xff]  ;;  %v1081_v50 = vld [vmem:[%s2220_s3 + $0x6e0] sm:$0xff]  ;;  %v747_v36 = vrot.slane %v2007_v45, 4 }
  0xba   :  { %581 = vmatpush.msrb.mxu0 %v993_v51  ;;  %598 = vmatpush.msrb.mxu1 %v1012_v52  ;;  %v1096_v51 = vld [vmem:[%s2220_s3 + $0x750] sm:$0xff]  ;;  %v1115_v52 = vld [vmem:[%s2220_s3 + $0x7e8] sm:$0xff] }
  0xbb   :  { %670 = vmatpush.msrb.mxu2 %v1027_v53  ;;  %687 = vmatpush.msrb.mxu3 %v1046_v54  ;;  %v1061_v53 = vld [vmem:[%s2220_s3 + $0x640] sm:$0xff]  ;;  %v1080_v54 = vld [vmem:[%s2220_s3 + $0x6d8] sm:$0xff] }
  0xbc   :  { %582 = vmatpush.msrb.mxu0 %v992_v55  ;;  %599 = vmatpush.msrb.mxu1 %v1011_v56  ;;  %v1095_v55 = vld [vmem:[%s2220_s3 + $0x748] sm:$0xff]  ;;  %v1114_v56 = vld [vmem:[%s2220_s3 + $0x7e0] sm:$0xff] }
  0xbd   :  { %671 = vmatpush.msrb.mxu2 %v1026_v57  ;;  %688 = vmatpush.msrb.mxu3 %v1045_v58  ;;  %v1060_v57 = vld [vmem:[%s2220_s3 + $0x638] sm:$0xff]  ;;  %v1079_v58 = vld [vmem:[%s2220_s3 + $0x6d0] sm:$0xff] }
  0xbe   :  { %583 = vmatpush.msrb.mxu0 %v991_v59  ;;  %600 = vmatpush.msrb.mxu1 %v1010_v60  ;;  %v1094_v59 = vld [vmem:[%s2220_s3 + $0x740] sm:$0xff]  ;;  %v1113_v60 = vld [vmem:[%s2220_s3 + $0x7d8] sm:$0xff] }
  0xbf   :  { %672 = vmatpush.msrb.mxu2 %v1025_v61  ;;  %689 = vmatpush.msrb.mxu3 %v1044_v62  ;;  %v1059_v61 = vld [vmem:[%s2220_s3 + $0x630] sm:$0xff]  ;;  %v1078_v62 = vld [vmem:[%s2220_s3 + $0x6c8] sm:$0xff] }
  0xc0   :  { %584 = vmatpush.msrb.mxu0 %v990_v63  ;;  %601 = vmatpush.msrb.mxu1 %v1009_v0  ;;  %v1093_v63 = vld [vmem:[%s2220_s3 + $0x738] sm:$0xff]  ;;  %v1112_v0 = vld [vmem:[%s2220_s3 + $0x7d0] sm:$0xff] }
  0xc1   :  { %673 = vmatpush.msrb.mxu2 %v1024_v1  ;;  %690 = vmatpush.msrb.mxu3 %v1043_v2  ;;  %v1058_v1 = vld [vmem:[%s2220_s3 + $0x628] sm:$0xff]  ;;  %v1077_v2 = vld [vmem:[%s2220_s3 + $0x6c0] sm:$0xff] }
  0xc2   :  { %585 = vmatpush.msrb.mxu0 %v989_v3  ;;  %602 = vmatpush.msrb.mxu1 %v1008_v6  ;;  %v1092_v3 = vld [vmem:[%s2220_s3 + $0x730] sm:$0xff]  ;;  %v1111_v6 = vld [vmem:[%s2220_s3 + $0x7c8] sm:$0xff] }
  0xc3   :  { %674 = vmatpush.msrb.mxu2 %v1023_v7  ;;  %691 = vmatpush.msrb.mxu3 %v1042_v8  ;;  %v658_v7 = vrot.slane %v1996_v41, 2  ;;  %v1057_v8 = vld [vmem:[%s2220_s3 + $0x620] sm:$0xff] }
  0xc4   :  { %586 = vmatpush.msrb.mxu0 %v988_v9  ;;  %603 = vmatpush.msrb.mxu1 %v1007_v11  ;;  %v1076_v9 = vld [vmem:[%s2220_s3 + $0x6b8] sm:$0xff]  ;;  %v1091_v11 = vld [vmem:[%s2220_s3 + $0x728] sm:$0xff] }
  0xc5   :  { %675 = vmatpush.msrb.mxu2 %v1022_v12  ;;  %692 = vmatpush.msrb.mxu3 %v1041_v13  ;;  %v1110_v12 = vld [vmem:[%s2220_s3 + $0x7c0] sm:$0xff]  ;;  %v659_v13 = vrot.slane %v2007_v45, 2 }
  0xc6   :  { %587 = vmatpush.msrb.mxu0 %v987_v14  ;;  %604 = vmatpush.msrb.mxu1 %v1006_v15  ;;  %v1056_v14 = vld [vmem:[%s2220_s3 + $0x618] sm:$0xff]  ;;  %v1075_v15 = vld [vmem:[%s2220_s3 + $0x6b0] sm:$0xff] }
  0xc7   :  { %676 = vmatpush.msrb.mxu2 %v1021_v17  ;;  %693 = vmatpush.msrb.mxu3 %v1040_v18  ;;  %v1109_v17 = vld [vmem:[%s2220_s3 + $0x7b8] sm:$0xff]  ;;  %v1055_v18 = vld [vmem:[%s2220_s3 + $0x610] sm:$0xff] }
  0xc8   :  { %750 = vmatpush.msra.mxu0 %v1068_v19  ;;  %605 = vmatpush.msrb.mxu1 %v1005_v20  ;;  %v1074_v19 = vld [vmem:[%s2220_s3 + $0x6a8] sm:$0xff]  ;;  %v1089_v20 = vld [vmem:[%s2220_s3 + $0x718] sm:$0xff] }
  0xc9   :  { %677 = vmatpush.msrb.mxu2 %v1020_v22  ;;  %694 = vmatpush.msrb.mxu3 %v1039_v23  ;;  %v1054_v22 = vld [vmem:[%s2220_s3 + $0x608] sm:$0xff]  ;;  %v1073_v23 = vld [vmem:[%s2220_s3 + $0x6a0] sm:$0xff] }
  0xca   :  { %751 = vmatpush.msra.mxu0 %v1067_v25  ;;  %606 = vmatpush.msrb.mxu1 %v1004_v28  ;;  %v1107_v25 = vld [vmem:[%s2220_s3 + $0x7a8] sm:$0xff] }
  0xcb   :  { %838 = vmatpush.msra.mxu2 %v1101_v26  ;;  %695 = vmatpush.msrb.mxu3 %v1038_v5  ;;  %v1053_v26 = vld [vmem:[%s2220_s3 + $0x600] sm:$0xff]  ;;  %v1087_v28 = vld [vmem:[%s2220_s3 + $0x708] sm:$0xff] }
  0xcc   :  { %752 = vmatpush.msra.mxu0 %v1066_v30  ;;  %607 = vmatpush.msrb.mxu1 %v1003_v34  ;;  %v1106_v5 = vld [vmem:[%s2220_s3 + $0x7a0] sm:$0xff]  ;;  %v746_v30 = vrot.slane %v1996_v41, 4  ;;  %v834_v34 = vrot.slane %v1996_v41, 6 }
  0xcd   :  { %839 = vmatpush.msra.mxu2 %v1100_v31  ;;  %696 = vmatpush.msrb.mxu3 %v1037_v4  ;;  %v1086_v31 = vld [vmem:[%s2220_s3 + $0x700] sm:$0xff]  ;;  %v1104_v4 = vld [vmem:[%s2220_s3 + $0x790] sm:$0xff] }
  0xce   :  { %753 = vmatpush.msra.mxu0 %v1065_v10  ;;  %770 = vmatpush.msra.mxu1 %v1084_v35  ;;  %v1069_v10 = vld [vmem:[%s2220_s3 + $0x680] sm:$0xff]  ;;  %v1103_v35 = vld [vmem:[%s2220_s3 + $0x788] sm:$0xff] }
  0xcf   :  { %840 = vmatpush.msra.mxu2 %v1099_v37  ;;  %697 = vmatpush.msrb.mxu3 %v1036_v38  ;;  %v1102_v37 = vld [vmem:[%s2220_s3 + $0x780] sm:$0xff]  ;;  %v835_v38 = vrot.slane %v2007_v45, 6 }
  0xd0   :  { %754 = vmatpush.msra.mxu0 %v1064_v39  ;;  %771 = vmatpush.msra.mxu1 %v1083_v40  ;;  %v1126_v39 = vld [vmem:[%s2221_s4] ss:$0 sm:$0xff] }
  0xd1   :  { %841 = vmatpush.msra.mxu2 %v1098_v42  ;;  %858 = vmatpush.msra.mxu3 %v1117_v43 }
  0xd2   :  { %588 = vmatmul.f32.vlgmr.msrb.gmra.mxu0 %v1996_v41  ;;  %772 = vmatpush.msra.mxu1 %v1082_v44  ;;  %v1127_v44 = vld [vmem:[%s2221_s4 + $0x1] ss:$0 sm:$0xff] }
  0xd3   :  { %755 = vmatpush.msra.mxu0 %v1063_v46  ;;  %842 = vmatpush.msra.mxu2 %v1097_v47 }
  0xd4   :  { %859 = vmatpush.msra.mxu3 %v1116_v48  ;;  %608 = vmatmul.f32.vlgmr.msrb.gmra.mxu1 %v2007_v45 }
  0xd5   :  { %756 = vmatpush.msra.mxu0 %v1062_v49  ;;  %773 = vmatpush.msra.mxu1 %v1081_v50  ;;  %v1128_v49 = vld [vmem:[%s2221_s4 + $0x2] ss:$0 sm:$0xff] }
  0xd6   :  { %843 = vmatpush.msra.mxu2 %v1096_v51  ;;  %860 = vmatpush.msra.mxu3 %v1115_v52  ;;  %v1129_v52 = vld [vmem:[%s2221_s4 + $0x3] ss:$0 sm:$0xff] }
  0xd7   :  { %757 = vmatpush.msra.mxu0 %v1061_v53  ;;  %774 = vmatpush.msra.mxu1 %v1080_v54 }
  0xd8   :  { %844 = vmatpush.msra.mxu2 %v1095_v55  ;;  %861 = vmatpush.msra.mxu3 %v1114_v56 }
  0xd9   :  { %758 = vmatpush.msra.mxu0 %v1060_v57  ;;  %775 = vmatpush.msra.mxu1 %v1079_v58 }
  0xda   :  { %845 = vmatpush.msra.mxu2 %v1094_v59  ;;  %862 = vmatpush.msra.mxu3 %v1113_v60  ;;  %v1130_v59 = vld [vmem:[%s2221_s4 + $0x4] ss:$0 sm:$0xff] }
  0xdb   :  { %759 = vmatpush.msra.mxu0 %v1059_v61  ;;  %776 = vmatpush.msra.mxu1 %v1078_v62 }
  0xdc   :  { %846 = vmatpush.msra.mxu2 %v1093_v63  ;;  %863 = vmatpush.msra.mxu3 %v1112_v0  ;;  %v1131_v0 = vld [vmem:[%s2221_s4 + $0x5] ss:$0 sm:$0xff] }
  0xdd   :  { %760 = vmatpush.msra.mxu0 %v1058_v1  ;;  %777 = vmatpush.msra.mxu1 %v1077_v2 }
  0xde   :  { %847 = vmatpush.msra.mxu2 %v1092_v3  ;;  %864 = vmatpush.msra.mxu3 %v1111_v6 }
  0xdf   :  { %678 = vmatmul.f32.vlgmr.msrb.gmra.mxu2 %v658_v7  ;;  %761 = vmatpush.msra.mxu0 %v1057_v8  ;;  %v1132_v7 = vld [vmem:[%s2221_s4 + $0x6] ss:$0 sm:$0xff] }
  0xe0   :  { %778 = vmatpush.msra.mxu1 %v1076_v9  ;;  %848 = vmatpush.msra.mxu2 %v1091_v11 }
  0xe1   :  { %865 = vmatpush.msra.mxu3 %v1110_v12  ;;  %762 = vmatpush.msra.mxu0 %v1056_v14 }
  0xe2   :  { %698 = vmatmul.f32.vlgmr.msrb.gmra.mxu3 %v659_v13  ;;  %779 = vmatpush.msra.mxu1 %v1075_v15  ;;  %v1133_v13 = vld [vmem:[%s2221_s4 + $0x7] ss:$0 sm:$0xff] }
  0xe3   :  { %849 = vmatpush.msra.mxu2 %v1090_v16  ;;  %866 = vmatpush.msra.mxu3 %v1109_v17 }
  0xe4   :  { %763 = vmatpush.msra.mxu0 %v1055_v18  ;;  %780 = vmatpush.msra.mxu1 %v1074_v19 }
  0xe5   :  { %850 = vmatpush.msra.mxu2 %v1089_v20  ;;  %867 = vmatpush.msra.mxu3 %v1108_v21 }
  0xe6   :  { %764 = vmatpush.msra.mxu0 %v1054_v22  ;;  %781 = vmatpush.msra.mxu1 %v1073_v23 }
  0xe7   :  { %851 = vmatpush.msra.mxu2 %v1088_v24  ;;  %868 = vmatpush.msra.mxu3 %v1107_v25 }
  0xe8   :  { %765 = vmatpush.msra.mxu0 %v1053_v26  ;;  %782 = vmatpush.msra.mxu1 %v1072_v27 }
  0xe9   :  { %852 = vmatpush.msra.mxu2 %v1087_v28  ;;  %869 = vmatpush.msra.mxu3 %v1106_v5 }
  0xea   :  { %766 = vmatmul.f32.vlgmr.msra.gmra.mxu0 %v746_v30  ;;  %783 = vmatpush.msra.mxu1 %v1071_v29 }
  0xeb   :  { %853 = vmatpush.msra.mxu2 %v1086_v31  ;;  %870 = vmatpush.msra.mxu3 %v1105_v32 }
  0xec   :  { %854 = vmatmul.f32.vlgmr.msra.gmra.mxu2 %v834_v34  ;;  %784 = vmatpush.msra.mxu1 %v1070_v33 }
  0xed   :  { %871 = vmatpush.msra.mxu3 %v1104_v4 }
  0xee   :  { %785 = vmatpush.msra.mxu1 %v1069_v10 }
  0xef   :  { %872 = vmatpush.msra.mxu3 %v1103_v35  ;;  %786 = vmatmul.f32.vlgmr.msra.gmra.mxu1 %v747_v36 }
  0xf1   :  { %873 = vmatpush.msra.mxu3 %v1102_v37 }
  0xf2   :  { %874 = vmatmul.f32.vlgmr.msra.gmra.mxu3 %v835_v38 }
 0x122   :  { %v243_v40 = vpop.f32.mrf.mxu0 }
 0x123   :  { %v244_v41 = vadd.f32 %v1126_v39, %v243_v40 }
 0x128   :  { %v263_v42 = vpop.f32.mrf.mxu1 }
 0x129   :  { %v264_v43 = vadd.f32 %v263_v42, %v244_v41 }
 0x12a   :  { %v329_v45 = vpop.f32.mrf.mxu2 }
 0x12b   :  { %267 = vst.msk [vmem:[%s2223_s5] sm:$0x3] %vm266_vm0, %v264_v43  ;;  %v330_v46 = vadd.f32 %v1127_v44, %v329_v45  ;;  %v417_v50 = vpop.f32.mrf.mxu0 }
 0x12c   :  { %v418_v53 = vadd.f32 %v1128_v49, %v417_v50 }
 0x130   :  { %v349_v47 = vpop.f32.mrf.mxu3 }
 0x131   :  { %v350_v48 = vadd.f32 %v349_v47, %v330_v46 }
 0x132   :  { %v437_v51 = vpop.f32.mrf.mxu1 }
 0x133   :  { %353 = vrot.lane.b32.xlu0 %v350_v48, %s1134_s28  ;;  %v505_v54 = vpop.f32.mrf.mxu2  ;;  %v438_v55 = vadd.f32 %v437_v51, %v418_v53 }
 0x134   :  { %v506_v56 = vadd.f32 %v1129_v52, %v505_v54 }
 0x13b   :  { %v525_v57 = vpop.f32.mrf.mxu3  ;;  %441 = vrot.lane.b32.xlu0 %v438_v55, %s1135_s30 }
 0x13c   :  { %v526_v58 = vadd.f32 %v525_v57, %v506_v56 }
 0x13e   :  { %529 = vrot.lane.b32.xlu1 %v526_v58, %s1136_s6 }
 0x14f   :  { %v589_v60 = vpop.f32.mrf.mxu0 }
 0x150   :  { %v590_v61 = vadd.f32 %v1130_v59, %v589_v60 }
 0x151   :  { %v609_v62 = vpop.f32.mrf.mxu1 }
 0x152   :  { %v610_v63 = vadd.f32 %v609_v62, %v590_v61 }
 0x154   :  { %613 = vrot.lane.b32.xlu1 %v610_v63, %s1137_s8 }
 0x162   :  { %v679_v1 = vpop.f32.mrf.mxu2 }
 0x163   :  { %v680_v2 = vadd.f32 %v1131_v0, %v679_v1 }
 0x165   :  { %v699_v3 = vpop.f32.mrf.mxu3 }
 0x166   :  { %v700_v6 = vadd.f32 %v699_v3, %v680_v2 }
 0x167   :  { %v767_v8 = vpop.f32.mrf.mxu0 }
 0x168   :  { %703 = vrot.lane.b32.xlu2 %v700_v6, %s1138_s13  ;;  %v768_v9 = vadd.f32 %v1132_v7, %v767_v8 }
 0x16c   :  { %v787_v11 = vpop.f32.mrf.mxu1 }
 0x16d   :  { %v788_v12 = vadd.f32 %v787_v11, %v768_v9 }
 0x16f   :  { %v855_v14 = vpop.f32.mrf.mxu2 }
 0x170   :  { %791 = vrot.lane.b32.xlu2 %v788_v12, %s1139_s16  ;;  %v856_v15 = vadd.f32 %v1133_v13, %v855_v14 }
 0x175   :  { %v875_v16 = vpop.f32.mrf.mxu3 }
 0x176   :  { %v876_v17 = vadd.f32 %v875_v16, %v856_v15 }
 0x178   :  { %879 = vrot.lane.b32.xlu0 %v876_v17, %s1140_s17 }
 0x1a5   :  { %v354_v18 = vpop.permute.xlu0 %353 }
 0x1a6   :  { %357 = vst.msk [vmem:[%s2223_s5] sm:$0x3] %vm356_vm1, %v354_v18 }
 0x1ad   :  { %v442_v19 = vpop.permute.xlu0 %441 }
 0x1ae   :  { %445 = vst.msk [vmem:[%s2223_s5] sm:$0x3] %vm444_vm2, %v442_v19 }
 0x1b0   :  { %v530_v20 = vpop.permute.xlu1 %529 }
 0x1b1   :  { %533 = vst.msk [vmem:[%s2223_s5] sm:$0x3] %vm532_vm3, %v530_v20 }
 0x1c2   :  { %v704_v21 = vpop.permute.xlu2 %703 }
 0x1c6   :  { %v614_v22 = vpop.permute.xlu1 %613 }
 0x1c7   :  { %617 = vst.msk [vmem:[%s2223_s5] sm:$0x3] %vm616_vm4, %v614_v22 }
 0x1c8   :  { %707 = vst.msk [vmem:[%s2223_s5] sm:$0x3] %vm706_vm5, %v704_v21 }
 0x1ca   :  { %v792_v23 = vpop.permute.xlu2 %791 }
 0x1cb   :  { %795 = vst.msk [vmem:[%s2223_s5] sm:$0x3] %vm794_vm6, %v792_v23 }
 0x1ea   :  { %v880_v24 = vpop.permute.xlu0 %879 }
 0x1eb   :  { %883 = vst.msk [vmem:[%s2223_s5] sm:$0x3] %vm882_vm7, %v880_v24 }

</bundles_post_ra>
